<compile_context>
chip_gen: v7x
topology: tpu7x:2x2x1
jax: 0.10.0
libtpu: 0.0.40
codegen_flags: <defaults>
</compile_context>

<pallas_src>
import jax
import jax.numpy as jnp
from jax.experimental import pallas as pl
from jax.experimental.pallas import tpu as pltpu


def _round_up(x, m):
    return (x + m - 1) // m * m


def _cdiv(a, b):
    return -(-a // b)


_VMEM_BUDGET = 24 << 20   # bytes for double-buffered pipeline buffers (all gens)
_TM_CAP = 1024


# --------------------------------------------------------------------------
# Path 1: weight resident in VMEM, K grid collapsed (typical feature sizes).
# x: (tm, K)  w: (K, N_pad)  b: (1, N_pad)  o: (tm, N_pad)
# --------------------------------------------------------------------------
def _resident_w_kernel(x_ref, w_ref, b_ref, o_ref):
    o_ref[...] = (
        jnp.dot(x_ref[...], w_ref[...], preferred_element_type=jnp.float32)
        + b_ref[...]
    ).astype(o_ref.dtype)


# --------------------------------------------------------------------------
# Path 2: tiled (M, N, K) fallback for weights too large to keep resident.
# --------------------------------------------------------------------------
def _tiled_kernel_f32out(x_ref, w_ref, b_ref, o_ref):
    """f32 output: accumulate directly into o_ref, bias folded into k==0 init."""
    k = pl.program_id(2)

    @pl.when(k == 0)
    def _():
        o_ref[...] = jnp.broadcast_to(b_ref[...].astype(o_ref.dtype), o_ref.shape)

    o_ref[...] += jnp.dot(
        x_ref[...], w_ref[...], preferred_element_type=jnp.float32
    ).astype(o_ref.dtype)


def _tiled_kernel_acc(x_ref, w_ref, b_ref, o_ref, acc_ref):
    """Non-f32 output: f32 VMEM accumulator, cast on the last K step."""
    k = pl.program_id(2)

    @pl.when(k == 0)
    def _():
        acc_ref[...] = jnp.broadcast_to(
            b_ref[...].astype(jnp.float32), acc_ref.shape)

    acc_ref[...] += jnp.dot(x_ref[...], w_ref[...],
                            preferred_element_type=jnp.float32)

    @pl.when(k == pl.num_programs(2) - 1)
    def _():
        o_ref[...] = acc_ref[...].astype(o_ref.dtype)


def time_distributed_linear(x, weight, bias, *, batch_first=True,
                            compute_dtype=None, force_pallas=False):
    """Equivalent of TimeDistributed(nn.Linear(F_IN, F_OUT), batch_first)(x).

    x:      (B, T, F_IN) if batch_first else (T, B, F_IN)
    weight: (F_OUT, F_IN)   (torch nn.Linear convention)
    bias:   (F_OUT,)
    compute_dtype: optionally cast x / weight (e.g. jnp.bfloat16 on v6e/v7x);
                   accumulation stays f32, output keeps x.dtype.

    Because the inner Linear only touches the feature axis, the result is
    independent of the (B, T) ordering, so no transposes are needed.
    """
    del batch_first  # computation identical either way (see docstring)
    D0, D1, F_IN = x.shape
    F_OUT, f_in_w = weight.shape
    assert f_in_w == F_IN, (weight.shape, F_IN)
    M = D0 * D1
    out_dtype = x.dtype

    # Small-problem fast path: launch/pad overhead dominates the matmul.
    if not force_pallas and M * F_IN * F_OUT < (1 << 20):
        return (jnp.einsum("...f,of->...o", x, weight) + bias).astype(out_dtype)

    x2 = x.reshape(M, F_IN)                       # contiguous, free reshape
    N_pad = _round_up(F_OUT, 128)                 # lane-dense output stores

    # One-time weight relayout: (F_OUT, F_IN) -> (F_IN, N_pad).  Plain
    # (tm,K)@(K,N) dot in the kernel, no per-tile transpose stealing MXU slots.
    w_t = weight.T
    if N_pad != F_OUT:
        w_t = jnp.pad(w_t, ((0, 0), (0, N_pad - F_OUT)))
    b2 = bias.reshape(1, F_OUT)
    if N_pad != F_OUT:
        b2 = jnp.pad(b2, ((0, 0), (0, N_pad - F_OUT)))

    if compute_dtype is not None:
        x2 = x2.astype(compute_dtype)
        w_t = w_t.astype(compute_dtype)

    isz_x = x2.dtype.itemsize
    isz_w = w_t.dtype.itemsize
    isz_o = jnp.dtype(out_dtype).itemsize

    # ---------------- Path 1: resident weight, collapsed K ------------------
    # Double-buffer accounting (Pallas allocates 2 buffers even for a block
    # whose index never changes; pipeline_mode=pl.Buffered(1) could halve the
    # weight's share but is left out for lowering robustness).
    fixed = 2 * F_IN * N_pad * isz_w + 2 * 8 * N_pad * 4          # W + bias
    per_row = 2 * (F_IN * isz_x + N_pad * isz_o)                  # x + out
    avail = _VMEM_BUDGET - fixed
    tm_cap = min(_TM_CAP, _round_up(M, 8))
    tm = 0
    if avail >= per_row * 8:
        tm = max(8, min(tm_cap, (avail // per_row) // 8 * 8))
    use_resident = tm >= min(tm_cap, 128)

    if use_resident:
        # Give both v7x TensorCores work when one tile would cover all of M.
        if M >= 256 and _cdiv(M, tm) == 1:
            tm = _round_up(_cdiv(M, 2), 8)
        grid = (_cdiv(M, tm),)                    # ragged last block is masked
        need = fixed + tm * per_row
        out = pl.pallas_call(
            _resident_w_kernel,
            out_shape=jax.ShapeDtypeStruct((M, N_pad), out_dtype),
            grid_spec=pltpu.PrefetchScalarGridSpec(
                num_scalar_prefetch=0,
                grid=grid,
                in_specs=[
                    pl.BlockSpec((tm, F_IN), lambda i: (i, 0)),     # x rows
                    pl.BlockSpec((F_IN, N_pad), lambda i: (0, 0)),  # W, DMA'd once
                    pl.BlockSpec((1, N_pad), lambda i: (0, 0)),     # bias
                ],
                out_specs=pl.BlockSpec((tm, N_pad), lambda i: (i, 0)),
            ),
            compiler_params=pltpu.CompilerParams(
                dimension_semantics=("parallel",),
                vmem_limit_bytes=int(min(max(need * 5 // 4, 32 << 20), 48 << 20)),
            ),
        )(x2, w_t, b2)
    else:
        # -------------- Path 2: tiled (M, N, K), K reduction innermost ------
        K_pad = _round_up(F_IN, 128)
        tk = next(c for c in (1024, 512, 256, 128) if K_pad % c == 0)
        tn = next(c for c in (512, 256, 128) if N_pad % c == 0)
        f32_out = jnp.dtype(out_dtype) == jnp.dtype(jnp.float32)

        def footprint(tm_):
            return (2 * (tm_ * tk * isz_x + tk * tn * isz_w
                         + tm_ * tn * isz_o + 8 * tn * 4)
                    + (0 if f32_out else tm_ * tn * 4))

        tm = min(_TM_CAP, _round_up(M, 8))
        while tm > 8 and footprint(tm) > _VMEM_BUDGET:
            tm = max(8, _round_up(tm // 2, 8))

        # Zero-pad K only when needed: garbage along K is NOT safe to rely on
        # (stale VMEM may hold NaN/Inf and NaN*0 = NaN), unlike garbage M rows.
        xk = x2 if K_pad == F_IN else jnp.pad(x2, ((0, 0), (0, K_pad - F_IN)))
        wk = w_t if K_pad == F_IN else jnp.pad(w_t, ((0, K_pad - F_IN), (0, 0)))

        grid = (_cdiv(M, tm), N_pad // tn, K_pad // tk)
        kernel = _tiled_kernel_f32out if f32_out else _tiled_kernel_acc
        scratch = [] if f32_out else [pltpu.VMEM((tm, tn), jnp.float32)]
        need = footprint(tm)
        out = pl.pallas_call(
            kernel,
            out_shape=jax.ShapeDtypeStruct((M, N_pad), out_dtype),
            grid_spec=pltpu.PrefetchScalarGridSpec(
                num_scalar_prefetch=0,
                grid=grid,
                in_specs=[
                    pl.BlockSpec((tm, tk), lambda i, j, k: (i, k)),   # x
                    pl.BlockSpec((tk, tn), lambda i, j, k: (k, j)),   # W (K,N)
                    pl.BlockSpec((1, tn), lambda i, j, k: (0, j)),    # bias
                ],
                out_specs=pl.BlockSpec((tm, tn), lambda i, j, k: (i, j)),
                scratch_shapes=scratch,
            ),
            compiler_params=pltpu.CompilerParams(
                dimension_semantics=("parallel", "parallel", "arbitrary"),
                vmem_limit_bytes=int(min(max(need * 5 // 4, 32 << 20), 48 << 20)),
            ),
        )(xk, wk, b2)

    if N_pad != F_OUT:
        out = out[:, :F_OUT]
    return out.reshape(D0, D1, F_OUT)


if __name__ == "__main__":
    # Small shapes consistent with the module: batch=2, seq=8, hidden=32.
    B, T, F_IN, F_OUT = 2, 8, 32, 32

    key = jax.random.PRNGKey(0)
    kx, kw, kb = jax.random.split(key, 3)
    x = jax.random.normal(kx, (B, T, F_IN), dtype=jnp.float32)
    # Deterministic nn.Linear-style parameters (synthetic, not a checkpoint).
    bound = 1.0 / (F_IN ** 0.5)
    weight = jax.random.uniform(kw, (F_OUT, F_IN), dtype=jnp.float32,
                                minval=-bound, maxval=bound)
    bias = jax.random.uniform(kb, (F_OUT,), dtype=jnp.float32,
                              minval=-bound, maxval=bound)

    # force_pallas=True so the kernel (not the tiny-problem einsum path) runs.
    out = time_distributed_linear(x, weight, bias, batch_first=True,
                                  force_pallas=True)
    out = jax.block_until_ready(out)

    # Pure-JAX reference of the TimeDistributed(nn.Linear) forward.
    ref = jnp.einsum("btf,of->bto", x, weight) + bias
    assert out.shape == (B, T, F_OUT), out.shape
    assert jnp.allclose(out, ref, atol=1e-5, rtol=1e-5), "mismatch vs reference"

    print("KERNEL_OK")
</pallas_src>

<mosaic_0001>
module attributes {stable_mosaic.version = 11 : i64} {
  func.func @_resident_w_kernel(%arg0: i32, %arg1: memref<16x32xf32, #tpu.memory_space<vmem>>, %arg2: memref<32x128xf32, #tpu.memory_space<vmem>>, %arg3: memref<1x128xf32, #tpu.memory_space<vmem>>, %arg4: memref<16x128xf32, #tpu.memory_space<vmem>>) attributes {dimension_semantics = [#tpu.dimension_semantics<parallel>], iteration_bounds = array<i64: 1>, scalar_prefetch = 0 : i64, scratch_operands = 0 : i64, tpu.core_type = #tpu.core_type<tc>, window_params = [{transform_indices = @transform_0, window_bounds = array<i64: 16, 32>}, {pipeline_mode = #tpu.pipeline_mode<synchronous>, transform_indices = @transform_1, window_bounds = array<i64: 32, 128>}, {pipeline_mode = #tpu.pipeline_mode<synchronous>, transform_indices = @transform_2, window_bounds = array<i64: 1, 128>}, {transform_indices = @transform_3, window_bounds = array<i64: 16, 128>}]} {
    %c0 = arith.constant 0 : index
    %c0_0 = arith.constant 0 : index
    %0 = vector.load %arg1[%c0, %c0_0] : memref<16x32xf32, #tpu.memory_space<vmem>>, vector<16x32xf32>
    %c0_1 = arith.constant 0 : index
    %c0_2 = arith.constant 0 : index
    %1 = vector.load %arg2[%c0_1, %c0_2] : memref<32x128xf32, #tpu.memory_space<vmem>>, vector<32x128xf32>
    %cst = arith.constant dense<0.000000e+00> : vector<16x128xf32>
    %2 = tpu.matmul %0, %1, %cst {dimension_numbers = #tpu.dot_dimension_numbers<[1], [0], [0], [1], [0, 0, 1, 1], [], []>} : vector<16x32xf32>, vector<32x128xf32>, vector<16x128xf32> -> vector<16x128xf32>
    %c0_3 = arith.constant 0 : index
    %c0_4 = arith.constant 0 : index
    %3 = vector.load %arg3[%c0_3, %c0_4] : memref<1x128xf32, #tpu.memory_space<vmem>>, vector<1x128xf32>
    %4 = vector.broadcast %3 : vector<1x128xf32> to vector<16x128xf32>
    %5 = arith.addf %2, %4 : vector<16x128xf32>
    %c0_5 = arith.constant 0 : index
    %c0_6 = arith.constant 0 : index
    %6 = vector.load %arg4[%c0_5, %c0_6] : memref<16x128xf32, #tpu.memory_space<vmem>>, vector<16x128xf32>
    tpu.vector_store %arg4[%c0_5, %c0_6], %5 {strides = array<i32>} : memref<16x128xf32, #tpu.memory_space<vmem>>, vector<16x128xf32>,
    return
  }
  func.func @transform_0(%arg0: i32) -> (i32, i32) {
    %c0_i32 = arith.constant 0 : i32
    %c0_i32_0 = arith.constant 0 : i32
    return %arg0, %c0_i32 : i32, i32
  }
  func.func @transform_1(%arg0: i32) -> (i32, i32) {
    %c0_i32 = arith.constant 0 : i32
    %c0_i32_0 = arith.constant 0 : i32
    %c0_i32_1 = arith.constant 0 : i32
    return %c0_i32, %c0_i32_0 : i32, i32
  }
  func.func @transform_2(%arg0: i32) -> (i32, i32) {
    %c0_i32 = arith.constant 0 : i32
    %c0_i32_0 = arith.constant 0 : i32
    %c0_i32_1 = arith.constant 0 : i32
    return %c0_i32, %c0_i32_0 : i32, i32
  }
  func.func @transform_3(%arg0: i32) -> (i32, i32) {
    %c0_i32 = arith.constant 0 : i32
    %c0_i32_0 = arith.constant 0 : i32
    return %arg0, %c0_i32 : i32, i32
  }
}

</mosaic_0001>

<bundles_post_ra>
// kernel: tpu_custom_call.1
= control target key start
LH: loop header
LB: loop body
LE: loop exit
PB: predicated region body
PF: predicated region fallthrough
CT: control target
= control target key end

     0   :  { %8 = vsyncpa [#allocation3], 0  ;;  %s336_s0 = inlined_call_operand.hbm [shape: f32[16,32], index: 0, kind: input, shape index: {}]   ;;  %s337_s1 = inlined_call_operand.hbm [shape: f32[32,128], index: 1, kind: input, shape index: {}]   ;;  %s338_s2 = inlined_call_operand.vmem [shape: f32[1,128], index: 2, kind: input, shape index: {}]   ;;  %s339_s3 = inlined_call_operand.hbm [shape: f32[16,128], index: 3, kind: output, shape index: {}]  }
   0x1   :  { %9 = vsyncpa [#allocation6], 0 }
   0x2   :  { %10 = vsyncpa [#allocation4], 0  ;;  %s263_s12 = smov [#allocation2]   ;;  %s191_s16 = scalar_lea.hbm %s336_s0, 256 }
   0x3   :  { %s16_s13 = sshll.u32 %s263_s12, 4  ;;  %p192_p0 = scmp.ne.s32.totalorder %s336_s0, %s191_s16  ;;  %s17_s13 = int_to_ptr.vmem [resolvable:$true] %s16_s13 }
   0x4   :  { %p195_p1 = scmp.lt.u32.totalorder %s191_s16, %s336_s0 }
   0x6   :  { %p197_p2 = pnand %p195_p1, %p192_p0 }
   0x8   :  { %200 = shalt.err (!%p197_p2)
}
   0x9   :  { %s201_s21 = scalar_lea.vmem %s17_s13, 256  ;;  %p206_p4 = scmp.lt.s32.totalorder %s17_s13, %s17_s13 }
   0xa   :  { %p202_p3 = scmp.ne.s32.totalorder %s17_s13, %s201_s21  ;;  %p207_p5 = scmp.lt.s32.totalorder %s201_s21, %s201_s21 }
   0xc   :  { %p208_p6 = por %p207_p5, %p206_p4 }
   0xe   :  { %p209_p7 = pnand %p208_p6, %p202_p3 }
  0x10   :  { %212 = shalt.err (!%p209_p7)
}
  0x11   :  { %s264_s22 = smov 128   ;;  %s265_s23 = smov 8  }
  0x12   :  { %22 = dma.hbm_to_vmem [thread:$0]  %s336_s0, 256, %s17_s13, [#allocation3], %s264_s22, %s264_s22, %s265_s23  }
  0x13   :  { %s266_s26 = smov [#allocation5]   ;;  %s213_s30 = scalar_lea.hbm %s337_s1, 512 }
  0x14   :  { %s28_s27 = sshll.u32 %s266_s26, 4  ;;  %p214_p8 = scmp.ne.s32.totalorder %s337_s1, %s213_s30  ;;  %s29_s27 = int_to_ptr.vmem [resolvable:$true] %s28_s27 }
  0x15   :  { %p217_p9 = scmp.lt.u32.totalorder %s213_s30, %s337_s1 }
  0x17   :  { %p219_p10 = pnand %p217_p9, %p214_p8 }
  0x19   :  { %222 = shalt.err (!%p219_p10)
}
  0x1a   :  { %s223_s8 = scalar_lea.vmem %s29_s27, 512  ;;  %p228_p12 = scmp.lt.s32.totalorder %s29_s27, %s29_s27 }
  0x1b   :  { %p224_p11 = scmp.ne.s32.totalorder %s29_s27, %s223_s8  ;;  %p229_p13 = scmp.lt.s32.totalorder %s223_s8, %s223_s8 }
  0x1d   :  { %p230_p0 = por %p229_p13, %p228_p12 }
  0x1f   :  { %p231_p1 = pnand %p230_p0, %p224_p11 }
  0x21   :  { %234 = shalt.err (!%p231_p1)
}
  0x22   :  { %34 = dma.hbm_to_vmem [thread:$0]  %s337_s1, 512, %s29_s27, [#allocation6], %s264_s22, %s264_s22, %s265_s23  }
  0x23   :  { %257 = dma.done.wait [#allocation3], 256  }
  0x24   :  { %258 = vsyncadd [#allocation3], 4294967040 }
  0x25   :  { %259 = dma.done.wait [#allocation6], 512  }
  0x26   :  { %260 = vsyncadd [#allocation6], 4294966784  ;;  %vm56_vm0 = vcmask 261120   ;;  %v45_v0 = vld [vmem:[#allocation5] sm:$0xff]  ;;  %v46_v1 = vld [vmem:[#allocation5 + $0x8] sm:$0xff]  ;;  %s267_s11 = smov [#allocation7]  }
  0x27   :  { %v47_v2 = vld [vmem:[#allocation5 + $0x10] sm:$0xff]  ;;  %v178_v3 = vpack.c.bf16 %v46_v1, %v45_v0  ;;  %v48_v4 = vld [vmem:[#allocation5 + $0x18] sm:$0xff]  ;;  %s145_s12 = sshll.u32 %s267_s11, 4  ;;  %s146_s12 = int_to_ptr.vmem [resolvable:$true] %s145_s12 }
  0x28   :  { %v43_v5 = vld [vmem:[#allocation2] sm:$0xff]  ;;  %v182_v6 = vpack.c.bf16 %v48_v4, %v47_v2  ;;  %v44_v7 = vld [vmem:[#allocation2 + $0x8] sm:$0xff]  ;;  %s235_s13 = scalar_lea.vmem %s146_s12, 256  ;;  %p240_p3 = scmp.lt.s32.totalorder %s146_s12, %s146_s12 }
  0x29   :  { %175 = vmatprep.mubr.msk.f32.mxu0 %vm56_vm0, %v43_v5  ;;  %179 = vmatprep.subr.bf16.mxu0 %v178_v3  ;;  %v158_v8 = vld [vmem:[%s338_s2] ss:$0 sm:$0xff]  ;;  %p236_p2 = scmp.ne.s32.totalorder %s146_s12, %s235_s13  ;;  %p241_p4 = scmp.lt.s32.totalorder %s235_s13, %s235_s13 }
  0x2a   :  { %181 = vmatpush3.bf16.msra.mxu0 %v178_v3 }
  0x2b   :  { %183 = vmatprep.subr.bf16.mxu0 %v182_v6  ;;  %p242_p5 = por %p241_p4, %p240_p3 }
  0x2d   :  { %p243_p6 = pnand %p242_p5, %p236_p2 }
  0x2e   :  { %185 = vmatpush3.bf16.msra.mxu0 %v182_v6 }
  0x31   :  { %176 = vmatmul.mubr.msk.f32.vlgmr.msra.gmra.mrb[0].mxu0 %vm56_vm0, %v44_v7 }
 0x104   :  { %v177_v9 = vpop.f32.mrb[0].mxu0 }
 0x105   :  { %v135_v10 = vadd.f32 %v177_v9, %v158_v8  ;;  %v129_v11 = vpop.f32.mrb[1].mxu0 }
 0x106   :  { %v130_v12 = vadd.f32 %v158_v8, %v129_v11 }
 0x107   :  { %139 = vst [vmem:[#allocation7 + $0x8] sm:$0xff] %v135_v10 }
 0x108   :  { %138 = vst [vmem:[#allocation7] sm:$0xff] %v130_v12 }
 0x109   :  { %246 = shalt.err (!%p243_p6)
}
 0x10a   :  { %s247_s2 = scalar_lea.hbm %s339_s3, 256 }
 0x10b   :  { %p248_p7 = scmp.ne.s32.totalorder %s339_s3, %s247_s2  ;;  %p251_p8 = scmp.lt.u32.totalorder %s247_s2, %s339_s3 }
 0x10d   :  { %p253_p9 = pnand %p251_p8, %p248_p7 }
 0x10f   :  { %256 = shalt.err (!%p253_p9)
}
 0x110   :  { %151 = dma.vmem_to_hbm [thread:$0]  %s146_s12, 256, %s339_s3, [#allocation4], %s264_s22, %s264_s22, %s265_s23  }
 0x111   :  { %261 = dma.done.wait [#allocation4], 256  }
 0x112   :  { %262 = vsyncadd [#allocation4], 4294967040 }
 0x113   :  { %155 = vsyncpa [#allocation3], 1 }
 0x114   :  { %156 = vsyncpa [#allocation6], 1 }
 0x115   :  { %157 = vsyncpa [#allocation4], 1 }

</bundles_post_ra>
